<compile_context>
chip_gen: v6e
topology: v6e:2x2x1
jax: 0.10.0
libtpu: 0.0.40
codegen_flags: <defaults>
</compile_context>

<pallas_src>
import functools

import jax
import jax.numpy as jnp
from jax import lax
from jax.experimental import pallas as pl
from jax.experimental.pallas import tpu as pltpu


def _center_loss_kernel(lab_ref, f_ref, c_hbm, o_ref, c_vmem, acc_ref, *,
                        cos_dist: bool, batch_size: int):
    """Grid = (num_splits, tiles_per_split); one (TB, D) feature tile per step.

    lab_ref: (TB, 1)     int32 labels for this tile              (VMEM, auto)
    f_ref:   (TB, D)     raw features for this tile              (VMEM, auto)
    c_hbm:   (C,  D)     centers table, raw HBM ref              (ANY)
    o_ref:   (1, 8, 128) per-core partial-sum output row         (VMEM)
    c_vmem:  (C,  D)     per-core resident centers copy          (VMEM scratch)
    acc_ref: (TB, 1)     per-core running partial-sum vector     (VMEM scratch)
    """
    split = pl.program_id(0)
    i = pl.program_id(1)
    tiles_per_split = pl.num_programs(1)
    tile_b, _ = f_ref.shape
    num_classes = c_vmem.shape[0]

    @pl.when(i == 0)
    def _init():
        acc_ref[...] = jnp.zeros_like(acc_ref)
        # One-time (per core) copy of the centers table into VMEM; for the
        # cosine branch store it already L2-normalized so per-step work is
        # just the one-hot gather + two lane reductions.
        pltpu.sync_copy(c_hbm, c_vmem)
        if cos_dist:
            cf = c_vmem[...].astype(jnp.float32)
            inv_c = lax.rsqrt(
                jnp.maximum(jnp.sum(cf * cf, axis=1, keepdims=True), 1e-24))
            c_vmem[...] = (cf * inv_c).astype(c_vmem.dtype)

    f = f_ref[...].astype(jnp.float32)                          # (TB, D)
    lab = lab_ref[...]                                          # (TB, 1) int32

    # Fused gather: centers[labels] == one_hot(labels) @ centers, on the MXU,
    # in the centers' stored dtype (0/1 are exact in bf16), f32 accumulation.
    # (Out-of-range labels yield an all-zero row, i.e. a zero center.)
    onehot = (lab == lax.broadcasted_iota(
        jnp.int32, (tile_b, num_classes), 1)).astype(c_vmem.dtype)
    cb = jnp.dot(onehot, c_vmem[...],
                 preferred_element_type=jnp.float32)            # (TB, D)

    # Mask rows past the true batch size (padded last tile and any duplicated
    # clamped tiles produced by the megacore split). Mask BEFORE reducing.
    global_tile = split * tiles_per_split + i
    row = lax.broadcasted_iota(jnp.int32, (tile_b, 1), 0) + global_tile * tile_b
    valid = row < batch_size                                    # (TB, 1)

    s_ff = jnp.sum(f * f, axis=1, keepdims=True)                # (TB, 1)
    inv_f = lax.rsqrt(jnp.maximum(s_ff, 1e-24))     # == 1/max(||f||, 1e-12)

    if cos_dist:
        # c_vmem rows are already unit-norm -> cos = <f, c_hat> / ||f||.
        s_fc = jnp.sum(f * cb, axis=1, keepdims=True)
        per_row = jnp.where(valid, 1.0 - s_fc * inv_f, 0.0)
    else:
        fn = f * inv_f                              # F.normalize(features)
        diff = cb - fn                              # centers NOT normalized
        per_row = jnp.where(
            valid, jnp.sum(diff * diff, axis=1, keepdims=True), 0.0)

    acc_ref[...] += per_row

    @pl.when(i == tiles_per_split - 1)
    def _finalize():
        o_ref[...] = jnp.full(o_ref.shape, jnp.sum(acc_ref[...]),
                              dtype=jnp.float32)


def center_loss(features, labels, centers, *, cos_dist: bool = True):
    """JAX wrapper matching CenterLoss.forward(features, labels)."""
    B, D = features.shape
    C, D2 = centers.shape
    assert D2 == D

    labels2d = labels.astype(jnp.int32).reshape(B, 1)
    f_bytes = jnp.dtype(features.dtype).itemsize
    c_bytes = jnp.dtype(centers.dtype).itemsize

    # ---- Per-TensorCore VMEM capacity (v5e/v6e: 128 MiB, v7x: 64 MiB). ----
    try:
        info = pltpu.get_tpu_info()
        vmem_cap = int(getattr(info, "vmem_capacity_bytes", 64 * 1024 * 1024))
    except Exception:  # interpret mode / older runtimes
        vmem_cap = 64 * 1024 * 1024
    headroom = 8 * 1024 * 1024
    usable = max(vmem_cap - headroom, 8 * 1024 * 1024)

    # ---- Resident footprint: single-buffered centers copy (+ f32 temps used
    #      once while normalizing them). ----
    resident = C * D * c_bytes + 2 * C * D * 4 + 8 * 128 * 4

    # ---- Per-batch-row working set: double-buffered feature/label rows,
    #      f32 intermediates (f, cb, fn/diff), one-hot row, lane-padded
    #      (TB, 1) accumulator / reduction tiles. ----
    per_row = (2 * (D * f_bytes + 512)
               + 4 * D * 4
               + C * c_bytes
               + 2 * 512)
    budget = max(usable - resident, per_row * 8)
    tile_b = int(budget // per_row)
    tile_b = max(8, (tile_b // 8) * 8)
    tile_b = min(tile_b, 4096)
    if tile_b >= B:
        tile_b = B          # full-dim block is legal regardless of B % 8
    num_tiles = pl.cdiv(B, tile_b)

    # ---- Megacore split (v7x: 2 TCs). Neutral outer loop on v5e/v6e. ----
    num_splits = 2 if num_tiles >= 2 else 1
    tiles_per_split = pl.cdiv(num_tiles, num_splits)
    last_tile = num_tiles - 1

    def tile_idx(s, i):
        # Clamp so over-covering splits re-read the last tile (rows are then
        # fully masked out by `valid` inside the kernel).
        return (jnp.minimum(s * tiles_per_split + i, last_tile), 0)

    inv_divisor = (1.0 / B) if cos_dist else (1.0 / (B * D))

    needed = resident + tile_b * per_row + num_splits * 8 * 128 * 4
    vmem_limit = int(min(vmem_cap, max(needed + (4 << 20), 32 << 20)))

    kernel = functools.partial(_center_loss_kernel,
                               cos_dist=cos_dist, batch_size=B)

    out = pl.pallas_call(
        kernel,
        out_shape=jax.ShapeDtypeStruct((num_splits, 8, 128), jnp.float32),
        grid=(num_splits, tiles_per_split),
        in_specs=[
            pl.BlockSpec((tile_b, 1), tile_idx),          # labels tile
            pl.BlockSpec((tile_b, D), tile_idx),          # features tile
            pl.BlockSpec(memory_space=pl.ANY),            # centers, raw HBM
        ],
        out_specs=pl.BlockSpec((1, 8, 128), lambda s, i: (s, 0, 0)),
        scratch_shapes=[
            pltpu.VMEM((C, D), centers.dtype),            # resident centers
            pltpu.VMEM((tile_b, 1), jnp.float32),         # per-core accum
        ],
        compiler_params=pltpu.CompilerParams(
            dimension_semantics=("parallel", "arbitrary"),
            vmem_limit_bytes=vmem_limit),
    )(labels2d, features, centers)

    return jnp.sum(out[:, 0, 0]) * jnp.float32(inv_divisor)


def _reference_center_loss(features, labels, centers, cos_dist=True):
    """Pure-JAX reference mirroring the PyTorch module (for sanity check)."""
    fn = features / jnp.maximum(
        jnp.linalg.norm(features, axis=1, keepdims=True), 1e-12)
    if cos_dist:
        centers = centers / jnp.maximum(
            jnp.linalg.norm(centers, axis=1, keepdims=True), 1e-12)
    cb = centers[labels]
    if cos_dist:
        cos = jnp.sum(fn * cb, axis=1) / jnp.maximum(
            jnp.linalg.norm(fn, axis=1) * jnp.linalg.norm(cb, axis=1), 1e-8)
        return jnp.sum(1.0 - cos) / features.shape[0]
    return jnp.mean((cb - fn) ** 2)


if __name__ == "__main__":
    num_classes = 10
    embed_size = 32
    batch_size = 8

    key = jax.random.PRNGKey(0)
    k_feat, k_cent, k_lab = jax.random.split(key, 3)

    # Deterministic parameter init (torch.randn equivalent): centers ~ N(0, 1).
    centers = jax.random.normal(k_cent, (num_classes, embed_size),
                                dtype=jnp.float32)
    features = jax.random.normal(k_feat, (batch_size, embed_size),
                                 dtype=jnp.float32)
    labels = jax.random.randint(k_lab, (batch_size,), 0, num_classes,
                                dtype=jnp.int32)

    loss = center_loss(features, labels, centers, cos_dist=True)
    loss = jax.block_until_ready(loss)

    ref = _reference_center_loss(features, labels, centers, cos_dist=True)
    assert jnp.allclose(loss, ref, atol=1e-5, rtol=1e-5), (loss, ref)

    # Also exercise the MSE (cos_dist=False) branch.
    loss_mse = jax.block_until_ready(
        center_loss(features, labels, centers, cos_dist=False))
    ref_mse = _reference_center_loss(features, labels, centers, cos_dist=False)
    assert jnp.allclose(loss_mse, ref_mse, atol=1e-5, rtol=1e-5), (loss_mse,
                                                                   ref_mse)

    print("KERNEL_OK")
</pallas_src>

<mosaic_0001>
module attributes {stable_mosaic.version = 11 : i64} {
  func.func @_center_loss_kernel(%arg0: i32, %arg1: i32, %arg2: memref<8x1xi32, #tpu.memory_space<vmem>>, %arg3: memref<8x32xf32, #tpu.memory_space<vmem>>, %arg4: memref<10x32xf32, #tpu.memory_space<any>>, %arg5: memref<1x8x128xf32, #tpu.memory_space<vmem>>, %arg6: memref<10x32xf32, #tpu.memory_space<vmem>>, %arg7: memref<8x1xf32, #tpu.memory_space<vmem>>) attributes {dimension_semantics = [#tpu.dimension_semantics<parallel>, #tpu.dimension_semantics<arbitrary>], iteration_bounds = array<i64: 1, 1>, scalar_prefetch = 0 : i64, scratch_operands = 2 : i64, tpu.core_type = #tpu.core_type<tc>, window_params = [{transform_indices = @transform_0, window_bounds = array<i64: 8, 1>}, {transform_indices = @transform_1, window_bounds = array<i64: 8, 32>}, {}, {transform_indices = @transform_3, window_bounds = array<i64: 1, 8, 128>}]} {
    %c0_i32 = arith.constant 0 : i32
    %0 = arith.cmpi eq, %arg1, %c0_i32 : i32
    %1 = arith.extui %0 : i1 to i32
    %c0_i32_0 = arith.constant 0 : i32
    %2 = arith.cmpi ne, %1, %c0_i32_0 : i32
    scf.if %2 {
      %cst_18 = arith.constant 0.000000e+00 : f32
      %40 = vector.broadcast %cst_18 : f32 to vector<8x1xf32>
      %c0_19 = arith.constant 0 : index
      %c0_20 = arith.constant 0 : index
      %41 = vector.load %arg7[%c0_19, %c0_20] : memref<8x1xf32, #tpu.memory_space<vmem>>, vector<8x1xf32>
      tpu.vector_store %arg7[%c0_19, %c0_20], %40 {strides = array<i32>} : memref<8x1xf32, #tpu.memory_space<vmem>>, vector<8x1xf32>,
      "tpu.region"() ({
        %52 = tpu.sem_alloc : memref<!tpu.dma_semaphore, #tpu.memory_space<semaphore_mem>>
        tpu.enqueue_dma source(%arg4 : memref<10x32xf32, #tpu.memory_space<any>>) target(%arg6 : memref<10x32xf32, #tpu.memory_space<vmem>>) target_semaphore(%52 : memref<!tpu.dma_semaphore, #tpu.memory_space<semaphore_mem>>)
        tpu.wait_dma2 semaphore(%52 : memref<!tpu.dma_semaphore, #tpu.memory_space<semaphore_mem>>) src(%arg4 : memref<10x32xf32, #tpu.memory_space<any>>) dst(%arg6 : memref<10x32xf32, #tpu.memory_space<vmem>>)
        tpu.yield
      }) : () -> ()
      %c0_21 = arith.constant 0 : index
      %c0_22 = arith.constant 0 : index
      %42 = vector.load %arg6[%c0_21, %c0_22] : memref<10x32xf32, #tpu.memory_space<vmem>>, vector<10x32xf32>
      %43 = arith.mulf %42, %42 : vector<10x32xf32>
      %cst_23 = arith.constant dense<0.000000e+00> : vector<10xf32>
      %44 = vector.multi_reduction <add>, %43, %cst_23 [1] : vector<10x32xf32> to vector<10xf32>
      %45 = vector.shape_cast %44 : vector<10xf32> to vector<10x1xf32>
      %cst_24 = arith.constant 1.000000e-24 : f32
      %46 = vector.broadcast %cst_24 : f32 to vector<10x1xf32>
      %47 = arith.maximumf %45, %46 : vector<10x1xf32>
      %48 = math.rsqrt %47 : vector<10x1xf32>
      %49 = vector.broadcast %48 : vector<10x1xf32> to vector<10x32xf32>
      %50 = arith.mulf %42, %49 : vector<10x32xf32>
      %c0_25 = arith.constant 0 : index
      %c0_26 = arith.constant 0 : index
      %51 = vector.load %arg6[%c0_25, %c0_26] : memref<10x32xf32, #tpu.memory_space<vmem>>, vector<10x32xf32>
      tpu.vector_store %arg6[%c0_25, %c0_26], %50 {strides = array<i32>} : memref<10x32xf32, #tpu.memory_space<vmem>>, vector<10x32xf32>,
    } else {
    }
    %c0 = arith.constant 0 : index
    %c0_1 = arith.constant 0 : index
    %3 = vector.load %arg3[%c0, %c0_1] : memref<8x32xf32, #tpu.memory_space<vmem>>, vector<8x32xf32>
    %c0_2 = arith.constant 0 : index
    %c0_3 = arith.constant 0 : index
    %4 = vector.load %arg2[%c0_2, %c0_3] : memref<8x1xi32, #tpu.memory_space<vmem>>, vector<8x1xi32>
    %5 = tpu.iota {dimensions = array<i32: 1>} : vector<8x10xi32>
    %6 = vector.broadcast %4 : vector<8x1xi32> to vector<8x10xi32>
    %7 = arith.cmpi eq, %6, %5 : vector<8x10xi32>
    %8 = arith.extui %7 : vector<8x10xi1> to vector<8x10xi32>
    %9 = arith.sitofp %8 : vector<8x10xi32> to vector<8x10xf32>
    %c0_4 = arith.constant 0 : index
    %c0_5 = arith.constant 0 : index
    %10 = vector.load %arg6[%c0_4, %c0_5] : memref<10x32xf32, #tpu.memory_space<vmem>>, vector<10x32xf32>
    %cst = arith.constant dense<0.000000e+00> : vector<8x32xf32>
    %11 = tpu.matmul %9, %10, %cst {dimension_numbers = #tpu.dot_dimension_numbers<[1], [0], [0], [1], [0, 0, 1, 1], [], []>} : vector<8x10xf32>, vector<10x32xf32>, vector<8x32xf32> -> vector<8x32xf32>
    %c1_i32 = arith.constant 1 : i32
    %12 = arith.muli %arg0, %c1_i32 : i32
    %13 = arith.addi %12, %arg1 : i32
    %14 = tpu.iota {dimensions = array<i32: 0>} : vector<8x1xi32>
    %c8_i32 = arith.constant 8 : i32
    %15 = arith.muli %13, %c8_i32 : i32
    %16 = vector.broadcast %15 : i32 to vector<8x1xi32>
    %17 = arith.addi %14, %16 : vector<8x1xi32>
    %c8_i32_6 = arith.constant 8 : i32
    %18 = vector.broadcast %c8_i32_6 : i32 to vector<8x1xi32>
    %19 = arith.cmpi slt, %17, %18 : vector<8x1xi32>
    %20 = arith.mulf %3, %3 : vector<8x32xf32>
    %cst_7 = arith.constant dense<0.000000e+00> : vector<8xf32>
    %21 = vector.multi_reduction <add>, %20, %cst_7 [1] : vector<8x32xf32> to vector<8xf32>
    %22 = vector.shape_cast %21 : vector<8xf32> to vector<8x1xf32>
    %cst_8 = arith.constant 1.000000e-24 : f32
    %23 = vector.broadcast %cst_8 : f32 to vector<8x1xf32>
    %24 = arith.maximumf %22, %23 : vector<8x1xf32>
    %25 = math.rsqrt %24 : vector<8x1xf32>
    %26 = arith.mulf %3, %11 : vector<8x32xf32>
    %cst_9 = arith.constant dense<0.000000e+00> : vector<8xf32>
    %27 = vector.multi_reduction <add>, %26, %cst_9 [1] : vector<8x32xf32> to vector<8xf32>
    %28 = vector.shape_cast %27 : vector<8xf32> to vector<8x1xf32>
    %29 = arith.mulf %28, %25 : vector<8x1xf32>
    %cst_10 = arith.constant 1.000000e+00 : f32
    %30 = vector.broadcast %cst_10 : f32 to vector<8x1xf32>
    %31 = arith.subf %30, %29 : vector<8x1xf32>
    %cst_11 = arith.constant 0.000000e+00 : f32
    %32 = vector.broadcast %cst_11 : f32 to vector<8x1xf32>
    %33 = arith.select %19, %31, %32 : vector<8x1xi1>, vector<8x1xf32>
    %c0_12 = arith.constant 0 : index
    %c0_13 = arith.constant 0 : index
    %34 = vector.load %arg7[%c0_12, %c0_13] : memref<8x1xf32, #tpu.memory_space<vmem>>, vector<8x1xf32>
    %35 = arith.addf %34, %33 : vector<8x1xf32>
    %c0_14 = arith.constant 0 : index
    %c0_15 = arith.constant 0 : index
    %36 = vector.load %arg7[%c0_14, %c0_15] : memref<8x1xf32, #tpu.memory_space<vmem>>, vector<8x1xf32>
    tpu.vector_store %arg7[%c0_14, %c0_15], %35 {strides = array<i32>} : memref<8x1xf32, #tpu.memory_space<vmem>>, vector<8x1xf32>,
    %c0_i32_16 = arith.constant 0 : i32
    %37 = arith.cmpi eq, %arg1, %c0_i32_16 : i32
    %38 = arith.extui %37 : i1 to i32
    %c0_i32_17 = arith.constant 0 : i32
    %39 = arith.cmpi ne, %38, %c0_i32_17 : i32
    scf.if %39 {
      %c0_18 = arith.constant 0 : index
      %c0_19 = arith.constant 0 : index
      %40 = vector.load %arg7[%c0_18, %c0_19] : memref<8x1xf32, #tpu.memory_space<vmem>>, vector<8x1xf32>
      %41 = vector.shape_cast %40 : vector<8x1xf32> to vector<1x8x1xf32>
      %cst_20 = arith.constant dense<0.000000e+00> : vector<1xf32>
      %42 = vector.multi_reduction <add>, %41, %cst_20 [1, 2] : vector<1x8x1xf32> to vector<1xf32>
      %43 = vector.shape_cast %42 : vector<1xf32> to vector<1x1x1xf32>
      %44 = vector.extract %43[0, 0, 0] : f32 from vector<1x1x1xf32>
      %45 = vector.broadcast %44 : f32 to vector<1x8x128xf32>
      %c0_21 = arith.constant 0 : index
      %c0_22 = arith.constant 0 : index
      %c0_23 = arith.constant 0 : index
      %46 = vector.load %arg5[%c0_21, %c0_22, %c0_23] : memref<1x8x128xf32, #tpu.memory_space<vmem>>, vector<1x8x128xf32>
      tpu.vector_store %arg5[%c0_21, %c0_22, %c0_23], %45 {strides = array<i32>} : memref<1x8x128xf32, #tpu.memory_space<vmem>>, vector<1x8x128xf32>,
    } else {
    }
    return
  }
  func.func @transform_0(%arg0: i32, %arg1: i32) -> (i32, i32) {
    %c1_i32 = arith.constant 1 : i32
    %0 = arith.muli %arg0, %c1_i32 : i32
    %1 = arith.addi %0, %arg1 : i32
    %c0_i32 = arith.constant 0 : i32
    %2 = arith.minsi %1, %c0_i32 : i32
    %c0_i32_0 = arith.constant 0 : i32
    %c0_i32_1 = arith.constant 0 : i32
    return %2, %c0_i32_0 : i32, i32
  }
  func.func @transform_1(%arg0: i32, %arg1: i32) -> (i32, i32) {
    %c1_i32 = arith.constant 1 : i32
    %0 = arith.muli %arg0, %c1_i32 : i32
    %1 = arith.addi %0, %arg1 : i32
    %c0_i32 = arith.constant 0 : i32
    %2 = arith.minsi %1, %c0_i32 : i32
    %c0_i32_0 = arith.constant 0 : i32
    %c0_i32_1 = arith.constant 0 : i32
    return %2, %c0_i32_0 : i32, i32
  }
  func.func @transform_3(%arg0: i32, %arg1: i32) -> (i32, i32, i32) {
    %c0_i32 = arith.constant 0 : i32
    %c0_i32_0 = arith.constant 0 : i32
    %c0_i32_1 = arith.constant 0 : i32
    return %arg0, %c0_i32, %c0_i32_0 : i32, i32, i32
  }
}

</mosaic_0001>

<bundles_post_ra>
// kernel: tpu_custom_call.1
= control target key start
LH: loop header
LB: loop body
LE: loop exit
PB: predicated region body
PF: predicated region fallthrough
CT: control target
= control target key end

     0   :  { %8 = vsyncpa [#allocation5], 0  ;;  %vm71_vm0 = vcmask 7168   ;;  %v336_v0 = vmov 0.0   ;;  %s382_s0 = inlined_call_operand.vmem [shape: s32[8,1], index: 0, kind: input, shape index: {}]   ;;  %s383_s1 = inlined_call_operand.vmem [shape: f32[8,32], index: 1, kind: input, shape index: {}]   ;;  %s384_s2 = inlined_call_operand.hbm [shape: f32[10,32], index: 2, kind: input, shape index: {}]   ;;  %s385_s3 = inlined_call_operand.hbm [shape: f32[1,8,128], index: 3, kind: output, shape index: {}]  }
   0x1   :  { %72 = vst.msk [vmem:[#allocation3] sm:$0xff] %vm71_vm0, %v336_v0 }
   0x2   :  { %s337_s12 = smov [#allocation2]  }
   0x3   :  { %s80_s13 = sshll.u32 %s337_s12, 4  ;;  %s81_s13 = int_to_ptr.vmem [resolvable:$true] %s80_s13 }
   0x4   :  { %s300_s14 = scalar_lea.vmem %s81_s13, 160  ;;  %s304_s15 = scalar_lea.vmem %s81_s13, 256 }
   0x5   :  { %p301_p0 = scmp.ne.s32.totalorder %s81_s13, %s300_s14  ;;  %p305_p1 = scmp.lt.s32.totalorder %s81_s13, %s81_s13 }
   0x6   :  { %p306_p2 = scmp.lt.s32.totalorder %s304_s15, %s300_s14 }
   0x8   :  { %p307_p3 = por %p306_p2, %p305_p1 }
   0xa   :  { %p308_p4 = pnand %p307_p3, %p301_p0 }
   0xc   :  { %311 = shalt.err (!%p308_p4)  }
   0xd   :  { %83 = dma.hbm_to_vmem [thread:$0]  %s384_s2, 160, %s81_s13, [#allocation6] }
   0xe   :  { %332 = dma.done.wait [#allocation6], 160 }
   0xf   :  { %333 = vsyncadd [#allocation6], 4294967136  ;;  %v88_v1 = vld [vmem:[#allocation2 + $0x8] sm:$0x3]  ;;  %vm95_vm1 = vcmask 254976   ;;  %v87_v2 = vld [vmem:[#allocation2] sm:$0xff]  ;;  %270 = vmatprep.subr.mxu0 %v336_v0  ;;  %v109_v18 = vlaneseq }
  0x10   :  { %v90_v3 = vmul.f32 %v88_v1, %v88_v1  ;;  %v89_v4 = vmul.f32 %v87_v2, %v87_v2  ;;  %v338_v5 = vmov 0   ;;  %v108_v6 = vld [vmem:[%s382_s0] sm:$0xff]  ;;  %vm91_vm2 = vcmask 261120   ;;  %v218_v35 = vld [vmem:[#allocation3] sm:$0xff]  ;;  %s340_s0 = smov [#allocation4]  }
  0x11   :  { %284 = vset.pattern.permute.xlu1 %v338_v5  ;;  %285 = vset.pattern.permute.xlu0 %v338_v5  ;;  %vm339_vm3 = vmmov 0   ;;  %v107_v9 = vld [vmem:[%s383_s1] sm:$0xff]  ;;  %v110_v21 = vand.u32 127, %v109_v18  ;;  %vm123_vm4 = vcmask 1041408   ;;  %vm119_vm6 = vcmask 80896   ;;  %s244_s1 = sshll.u32 %s340_s0, 4  ;;  %s245_s1 = int_to_ptr.vmem [resolvable:$true] %s244_s1 }
  0x12   :  { %112 = vperm.xlu1 %284, %v108_v6   ;;  %v96_v7 = vsel %vm95_vm1, %v90_v3, 0.0  ;;  %v92_v8 = vsel %vm91_vm2, %v89_v4, 0.0  ;;  %274 = vmatprep.mubr.msk.f32.mxu0 %vm339_vm3, %v336_v0  ;;  %v204_v10 = vmul.f32 %v107_v9, %v107_v9  ;;  %s312_s22 = scalar_lea.vmem %s245_s1, 128  ;;  %p317_p6 = scmp.lt.s32.totalorder %s245_s1, %s245_s1 }
  0x13   :  { %97 = vadd.xlane.f32.xlu0 %v96_v7  ;;  %p313_p5 = scmp.ne.s32.totalorder %s245_s1, %s312_s22  ;;  %p318_p7 = scmp.lt.s32.totalorder %s312_s22, %s312_s22 }
  0x14   :  { %v206_v11 = vsel %vm91_vm2, %v204_v10, 0.0 }
  0x15   :  { %p319_p8 = por %p318_p7, %p317_p6 }
  0x17   :  { %93 = vadd.xlane.f32.xlu0 %v92_v8  ;;  %p320_p9 = pnand %p319_p8, %p313_p5 }
  0x36   :  { %207 = vadd.xlane.f32.xlu1 %v206_v11 }
  0x8d   :  { %v113_v22 = vpop.permute.xlu1 %112 }
  0x8e   :  { %vm114_vm5 = vcmp.eq.s32.totalorder %v113_v22, %v110_v21 }
  0x8f   :  { %v264_v24 = vsel %vm114_vm5, 1.0, %v336_v0 }
  0x9c   :  { %v98_v12 = vpop.xlane.xlu0 %97 }
  0x9d   :  { %v100_v13 = vmax.f32 %v98_v12, 1e-24 }
  0x9f   :  { %286 = vrsqrt.f32 %v100_v13 }
  0xa0   :  { %v94_v14 = vpop.xlane.xlu0 %93 }
  0xa1   :  { %v99_v15 = vmax.f32 %v94_v14, 1e-24 }
  0xa3   :  { %288 = vrsqrt.f32 %v99_v15 }
  0xac   :  { %v287_v16 = vpop.eup %286 }
  0xad   :  { %v104_v17 = vmul.f32 %v287_v16, %v88_v1 }
  0xaf   :  { %106 = vst.msk [vmem:[#allocation2 + $0x8] sm:$0x3] %vm95_vm1, %v104_v17 }
  0xb0   :  { %v289_v19 = vpop.eup %288 }
  0xb1   :  { %v103_v20 = vmul.f32 %v289_v19, %v87_v2 }
  0xb3   :  { %105 = vst.msk [vmem:[#allocation2] sm:$0xff] %vm91_vm2, %v103_v20 }
  0xb6   :  { %v118_v23 = vld [vmem:[#allocation2 + $0x8] sm:$0x3] }
  0xb7   :  { %271 = vmatpush3.msk.msra.mxu0 %vm123_vm4, %v118_v23 }
  0xb8   :  { %272 = vmatprep.subr.mxu0 %v336_v0 }
  0xba   :  { %v117_v25 = vld [vmem:[#allocation2] sm:$0xff] }
  0xbb   :  { %273 = vmatpush3.msra.mxu0 %v117_v25 }
  0xbc   :  { %275 = vmatmul.mubr.msk.f32.vlgmr.msra.gmra.mxu0 %vm119_vm6, %v264_v24 }
  0xbf   :  { %v208_v30 = vpop.xlane.xlu1 %207 }
  0xc0   :  { %v209_v31 = vmax.f32 %v208_v30, 1e-24 }
  0xc2   :  { %290 = vrsqrt.f32 %v209_v31 }
  0xcf   :  { %v291_v32 = vpop.eup %290 }
 0x17c   :  { %v193_v26 = vpop.f32.mrf.mxu0 }
 0x17d   :  { %v211_v27 = vmul.f32 %v193_v26, %v107_v9 }
 0x17e   :  { %v276_v28 = vpop.f32.mrf.mxu0 }
 0x17f   :  { %v212_v29 = vsel %vm91_vm2, %v211_v27, 0.0 }
 0x180   :  { %213 = vadd.xlane.f32.xlu0 %v212_v29 }
 0x209   :  { %v214_v33 = vpop.xlane.xlu0 %213 }
 0x20a   :  { %v215_v34 = vmul.f32 %v291_v32, %v214_v33 }
 0x20c   :  { %v216_v36 = vsub.f32 1.0, %v215_v34 }
 0x20e   :  { %v219_v37 = vadd.f32 %v218_v35, %v216_v36 }
 0x210   :  { %221 = vst.msk [vmem:[#allocation3] sm:$0xff] %vm71_vm0, %v219_v37 }
 0x217   :  { %v225_v38 = vld [vmem:[#allocation3] sm:$0xff] }
 0x218   :  { %v226_v39 = vsel %vm71_vm0, %v225_v38, 0.0 }
 0x219   :  { %227 = vadd.xlane.f32.xlu0 %v226_v39 }
 0x2a2   :  { %v228_v40 = vpop.xlane.xlu0 %227 }
 0x2a3   :  { %v229_v41 = vrot.slane %v228_v40, 4 }
 0x2a5   :  { %v230_v42 = vadd.f32 %v229_v41, %v228_v40 }
 0x2a7   :  { %v231_v43 = vrot.slane %v230_v42, 2 }
 0x2a9   :  { %v232_v44 = vadd.f32 %v231_v43, %v230_v42 }
 0x2ab   :  { %v233_v45 = vrot.slane %v232_v44, 1 }
 0x2ad   :  { %v234_v46 = vadd.f32 %v233_v45, %v232_v44 }
 0x2af   :  { %277 = vpush %v234_v46 }
 0x2e0   :  { %s278_s21 = spop %277 }
 0x2e1   :  { %v236_v47 = vstv %s278_s21 }
 0x2e2   :  { %237 = vst [vmem:[#allocation4] sm:$0xff] %v236_v47 }
 0x2e3   :  { %323 = shalt.err (!%p320_p9)
}
 0x2e4   :  { %247 = dma.vmem_to_hbm [thread:$0]  %s245_s1, 128, %s385_s3, [#allocation5]  }
 0x2e5   :  { %334 = dma.done.wait [#allocation5], 128  }
 0x2e6   :  { %335 = vsyncadd [#allocation5], 4294967168 }
 0x2e7   :  { %251 = vsyncpa [#allocation5], 1 }

</bundles_post_ra>
